<compile_context>
chip_gen: v7x
topology: tpu7x:2x2x1
jax: 0.10.0
libtpu: 0.0.40
codegen_flags: <defaults>
</compile_context>

<pallas_src>
import functools

import jax
import jax.numpy as jnp
from jax.experimental import pallas as pl
from jax.experimental.pallas import tpu as pltpu

_LANES = 128
_SUBLANES = 8
_MAX_TILE_ROWS = 2048  # 2048*128*4B = 1 MiB per input tile; 2 inputs x 2 bufs = 4 MiB VMEM


def _round_up(x, m):
    return (x + m - 1) // m * m


def _focal_terms(z, t, alpha, gamma):
    """Elementwise focal-modulated BCEWithLogits loss (f32 in, f32 out)."""
    # nn.BCEWithLogitsLoss(reduction='none') stable form:
    #   max(z, 0) - z*t + log(1 + exp(-|z|))
    e = jnp.exp(-jnp.abs(z))                          # single EUP exp, reused below
    bce = jnp.maximum(z, 0.0) - z * t + jnp.log(1.0 + e)
    # sigmoid(z) reusing e:  z >= 0 -> 1/(1+e) ;  z < 0 -> e/(1+e)
    r = 1.0 / (1.0 + e)
    p = jnp.where(z >= 0.0, r, e * r)
    # 1 - p_t  where  p_t = t*p + (1-t)*(1-p)   (algebraically simplified, >= 0)
    one_minus_pt = t * (1.0 - p) + (1.0 - t) * p
    alpha_factor = t * alpha + (1.0 - t) * (1.0 - alpha)
    # (1 - p_t) ** gamma  via exp/log (guaranteed Mosaic lowering); clamp keeps log finite.
    modulating = jnp.exp(gamma * jnp.log(jnp.maximum(one_minus_pt, 1e-37)))
    return bce * alpha_factor * modulating


def _focal_sum_kernel(pred_ref, true_ref, out_ref, *, alpha, gamma,
                      tile_rows, n_valid, apply_mask):
    z = pred_ref[...].astype(jnp.float32)
    t = true_ref[...].astype(jnp.float32)
    loss = _focal_terms(z, t, alpha, gamma)
    if apply_mask:  # static python condition: only emitted when padding exists
        i = pl.program_id(0)
        row = jax.lax.broadcasted_iota(jnp.int32, (tile_rows, _LANES), 0)
        lane = jax.lax.broadcasted_iota(jnp.int32, (tile_rows, _LANES), 1)
        flat = (i * tile_rows + row) * _LANES + lane
        loss = jnp.where(flat < n_valid, loss, 0.0)
    # Reduce the tile to one dense (8, 128) vreg slab (pure VPU adds,
    # lane-dense unmasked store); final tiny reduce happens in glue.
    partial = jnp.sum(loss.reshape(tile_rows // _SUBLANES, _SUBLANES, _LANES), axis=0)
    out_ref[...] = partial[None]


def _focal_elem_kernel(pred_ref, true_ref, out_ref, *, alpha, gamma):
    z = pred_ref[...].astype(jnp.float32)
    t = true_ref[...].astype(jnp.float32)
    out_ref[...] = _focal_terms(z, t, alpha, gamma)


def _flatten_pad(x, m_pad):
    flat = x.reshape(-1)
    pad = m_pad * _LANES - flat.shape[0]
    if pad:
        flat = jnp.pad(flat, (0, pad))
    return flat.reshape(m_pad, _LANES)


def focal_loss(pred, true, gamma=1.5, alpha=0.25, reduction='mean'):
    """FocalLoss(nn.BCEWithLogitsLoss(), gamma, alpha).forward(pred, true)."""
    assert pred.shape == true.shape
    n = 1
    for d in pred.shape:
        n *= int(d)
    m = -(-n // _LANES)                                   # rows of 128 lanes
    tile_rows = min(_MAX_TILE_ROWS, _round_up(m, _SUBLANES))
    m_pad = _round_up(m, tile_rows)
    num_blocks = m_pad // tile_rows
    apply_mask = (m_pad * _LANES) != n

    pred2d = _flatten_pad(pred, m_pad)
    true2d = _flatten_pad(true, m_pad)

    in_specs = [pl.BlockSpec((tile_rows, _LANES), lambda i: (i, 0)),
                pl.BlockSpec((tile_rows, _LANES), lambda i: (i, 0))]

    if reduction == 'none':
        out = pl.pallas_call(
            functools.partial(_focal_elem_kernel, alpha=alpha, gamma=gamma),
            out_shape=jax.ShapeDtypeStruct((m_pad, _LANES), jnp.float32),
            grid_spec=pltpu.PrefetchScalarGridSpec(
                num_scalar_prefetch=0, grid=(num_blocks,),
                in_specs=in_specs,
                out_specs=pl.BlockSpec((tile_rows, _LANES), lambda i: (i, 0))),
            compiler_params=pltpu.CompilerParams(
                dimension_semantics=("parallel",)),
        )(pred2d, true2d)
        return out.reshape(-1)[:n].reshape(pred.shape)

    partials = pl.pallas_call(
        functools.partial(_focal_sum_kernel, alpha=alpha, gamma=gamma,
                          tile_rows=tile_rows, n_valid=n,
                          apply_mask=apply_mask),
        out_shape=jax.ShapeDtypeStruct((num_blocks, _SUBLANES, _LANES), jnp.float32),
        grid_spec=pltpu.PrefetchScalarGridSpec(
            num_scalar_prefetch=0, grid=(num_blocks,),
            in_specs=in_specs,
            out_specs=pl.BlockSpec((1, _SUBLANES, _LANES), lambda i: (i, 0, 0))),
        compiler_params=pltpu.CompilerParams(
            dimension_semantics=("parallel",)),
    )(pred2d, true2d)

    total = jnp.sum(partials)
    if reduction == 'sum':
        return total
    if reduction == 'mean':
        return total / jnp.float32(n)
    raise ValueError(f"unknown reduction: {reduction}")


# --------------------------- pure-JAX reference ----------------------------- #

def focal_loss_ref(pred, true, gamma=1.5, alpha=0.25, reduction='mean'):
    z = pred.astype(jnp.float32)
    t = true.astype(jnp.float32)
    bce = jnp.maximum(z, 0.0) - z * t + jnp.log1p(jnp.exp(-jnp.abs(z)))
    p = jax.nn.sigmoid(z)
    p_t = t * p + (1.0 - t) * (1.0 - p)
    alpha_factor = t * alpha + (1.0 - t) * (1.0 - alpha)
    loss = bce * alpha_factor * (1.0 - p_t) ** gamma
    if reduction == 'mean':
        return loss.mean()
    if reduction == 'sum':
        return loss.sum()
    return loss


# --------------------------------- demo ------------------------------------- #

if __name__ == "__main__":
    key = jax.random.PRNGKey(0)
    k1, k2, k3, k4 = jax.random.split(key, 4)

    shape = (2, 4, 16, 16)                               # batch=2, channels=4, 16x16
    pred = jax.random.normal(k1, shape, jnp.float32)     # logits
    true = (jax.random.uniform(k2, shape) > 0.5).astype(jnp.float32)

    # captured reduction of nn.BCEWithLogitsLoss() is 'mean'
    loss = jax.block_until_ready(focal_loss(pred, true, gamma=1.5, alpha=0.25))
    ref = focal_loss_ref(pred, true, gamma=1.5, alpha=0.25)
    if not jnp.allclose(loss, ref, rtol=1e-4, atol=1e-5):
        raise AssertionError(f"mean-reduction mismatch: pallas={loss} ref={ref}")

    # 'none' reduction path (elementwise output)
    loss_none = jax.block_until_ready(focal_loss(pred, true, reduction='none'))
    if not jnp.allclose(loss_none, focal_loss_ref(pred, true, reduction='none'),
                        rtol=1e-4, atol=1e-5):
        raise AssertionError("elementwise-reduction mismatch")

    # non-128-aligned shape exercises the in-kernel padding mask
    pred_s = jax.random.normal(k3, (3, 5, 7), jnp.float32)
    true_s = (jax.random.uniform(k4, (3, 5, 7)) > 0.5).astype(jnp.float32)
    loss_s = jax.block_until_ready(focal_loss(pred_s, true_s))
    ref_s = focal_loss_ref(pred_s, true_s)
    if not jnp.allclose(loss_s, ref_s, rtol=1e-4, atol=1e-5):
        raise AssertionError(f"masked-tail mismatch: pallas={loss_s} ref={ref_s}")

    print("KERNEL_OK")
</pallas_src>

<mosaic_0001>
module attributes {stable_mosaic.version = 11 : i64} {
  func.func @_focal_sum_kernel(%arg0: i32, %arg1: memref<16x128xf32, #tpu.memory_space<vmem>>, %arg2: memref<16x128xf32, #tpu.memory_space<vmem>>, %arg3: memref<1x8x128xf32, #tpu.memory_space<vmem>>) attributes {dimension_semantics = [#tpu.dimension_semantics<parallel>], iteration_bounds = array<i64: 1>, scalar_prefetch = 0 : i64, scratch_operands = 0 : i64, tpu.core_type = #tpu.core_type<tc>, window_params = [{transform_indices = @transform_0, window_bounds = array<i64: 16, 128>}, {transform_indices = @transform_1, window_bounds = array<i64: 16, 128>}, {transform_indices = @transform_2, window_bounds = array<i64: 1, 8, 128>}]} {
    %c0 = arith.constant 0 : index
    %c0_0 = arith.constant 0 : index
    %0 = vector.load %arg1[%c0, %c0_0] : memref<16x128xf32, #tpu.memory_space<vmem>>, vector<16x128xf32>
    %c0_1 = arith.constant 0 : index
    %c0_2 = arith.constant 0 : index
    %1 = vector.load %arg2[%c0_1, %c0_2] : memref<16x128xf32, #tpu.memory_space<vmem>>, vector<16x128xf32>
    %2 = math.absf %0 : vector<16x128xf32>
    %cst = arith.constant 0.000000e+00 : f32
    %3 = vector.broadcast %cst : f32 to vector<16x128xf32>
    %4 = arith.subf %3, %2 : vector<16x128xf32>
    %5 = math.exp %4 : vector<16x128xf32>
    %cst_3 = arith.constant 0.000000e+00 : f32
    %6 = vector.broadcast %cst_3 : f32 to vector<16x128xf32>
    %7 = arith.maximumf %0, %6 : vector<16x128xf32>
    %8 = arith.mulf %0, %1 : vector<16x128xf32>
    %9 = arith.subf %7, %8 : vector<16x128xf32>
    %cst_4 = arith.constant 1.000000e+00 : f32
    %10 = vector.broadcast %cst_4 : f32 to vector<16x128xf32>
    %11 = arith.addf %10, %5 : vector<16x128xf32>
    %12 = math.log %11 : vector<16x128xf32>
    %13 = arith.addf %9, %12 : vector<16x128xf32>
    %cst_5 = arith.constant 1.000000e+00 : f32
    %14 = vector.broadcast %cst_5 : f32 to vector<16x128xf32>
    %15 = arith.addf %14, %5 : vector<16x128xf32>
    %cst_6 = arith.constant 1.000000e+00 : f32
    %16 = vector.broadcast %cst_6 : f32 to vector<16x128xf32>
    %17 = arith.divf %16, %15 : vector<16x128xf32>
    %cst_7 = arith.constant 0.000000e+00 : f32
    %18 = vector.broadcast %cst_7 : f32 to vector<16x128xf32>
    %19 = arith.cmpf oge, %0, %18 : vector<16x128xf32>
    %20 = arith.mulf %5, %17 : vector<16x128xf32>
    %21 = arith.select %19, %17, %20 : vector<16x128xi1>, vector<16x128xf32>
    %cst_8 = arith.constant 1.000000e+00 : f32
    %22 = vector.broadcast %cst_8 : f32 to vector<16x128xf32>
    %23 = arith.subf %22, %21 : vector<16x128xf32>
    %24 = arith.mulf %1, %23 : vector<16x128xf32>
    %cst_9 = arith.constant 1.000000e+00 : f32
    %25 = vector.broadcast %cst_9 : f32 to vector<16x128xf32>
    %26 = arith.subf %25, %1 : vector<16x128xf32>
    %27 = arith.mulf %26, %21 : vector<16x128xf32>
    %28 = arith.addf %24, %27 : vector<16x128xf32>
    %cst_10 = arith.constant 2.500000e-01 : f32
    %29 = vector.broadcast %cst_10 : f32 to vector<16x128xf32>
    %30 = arith.mulf %1, %29 : vector<16x128xf32>
    %cst_11 = arith.constant 1.000000e+00 : f32
    %31 = vector.broadcast %cst_11 : f32 to vector<16x128xf32>
    %32 = arith.subf %31, %1 : vector<16x128xf32>
    %cst_12 = arith.constant 7.500000e-01 : f32
    %33 = vector.broadcast %cst_12 : f32 to vector<16x128xf32>
    %34 = arith.mulf %32, %33 : vector<16x128xf32>
    %35 = arith.addf %30, %34 : vector<16x128xf32>
    %cst_13 = arith.constant 9.99999991E-38 : f32
    %36 = vector.broadcast %cst_13 : f32 to vector<16x128xf32>
    %37 = arith.maximumf %28, %36 : vector<16x128xf32>
    %38 = math.log %37 : vector<16x128xf32>
    %cst_14 = arith.constant 1.500000e+00 : f32
    %39 = vector.broadcast %cst_14 : f32 to vector<16x128xf32>
    %40 = arith.mulf %39, %38 : vector<16x128xf32>
    %41 = math.exp %40 : vector<16x128xf32>
    %42 = arith.mulf %13, %35 : vector<16x128xf32>
    %43 = arith.mulf %42, %41 : vector<16x128xf32>
    %44 = vector.shape_cast %43 : vector<16x128xf32> to vector<2x8x128xf32>
    %cst_15 = arith.constant dense<0.000000e+00> : vector<8x128xf32>
    %45 = vector.multi_reduction <add>, %44, %cst_15 [0] : vector<2x8x128xf32> to vector<8x128xf32>
    %46 = vector.shape_cast %45 : vector<8x128xf32> to vector<1x8x128xf32>
    %c0_16 = arith.constant 0 : index
    %c0_17 = arith.constant 0 : index
    %c0_18 = arith.constant 0 : index
    %47 = vector.load %arg3[%c0_16, %c0_17, %c0_18] : memref<1x8x128xf32, #tpu.memory_space<vmem>>, vector<1x8x128xf32>
    tpu.vector_store %arg3[%c0_16, %c0_17, %c0_18], %46 {strides = array<i32>} : memref<1x8x128xf32, #tpu.memory_space<vmem>>, vector<1x8x128xf32>,
    return
  }
  func.func @transform_0(%arg0: i32) -> (i32, i32) {
    %c0_i32 = arith.constant 0 : i32
    %c0_i32_0 = arith.constant 0 : i32
    return %arg0, %c0_i32 : i32, i32
  }
  func.func @transform_1(%arg0: i32) -> (i32, i32) {
    %c0_i32 = arith.constant 0 : i32
    %c0_i32_0 = arith.constant 0 : i32
    return %arg0, %c0_i32 : i32, i32
  }
  func.func @transform_2(%arg0: i32) -> (i32, i32, i32) {
    %c0_i32 = arith.constant 0 : i32
    %c0_i32_0 = arith.constant 0 : i32
    %c0_i32_1 = arith.constant 0 : i32
    return %arg0, %c0_i32, %c0_i32_0 : i32, i32, i32
  }
}

</mosaic_0001>

<bundles_post_ra>
// kernel: tpu_custom_call.1
= control target key start
LH: loop header
LB: loop body
LE: loop exit
PB: predicated region body
PF: predicated region fallthrough
CT: control target
= control target key end

     0   :  { %7 = vsyncpa [#allocation3], 0  ;;  %s279_s0 = inlined_call_operand.hbm [shape: f32[16,128], index: 0, kind: input, shape index: {}]   ;;  %s280_s1 = inlined_call_operand.hbm [shape: f32[16,128], index: 1, kind: input, shape index: {}]   ;;  %s281_s2 = inlined_call_operand.hbm [shape: f32[1,8,128], index: 2, kind: output, shape index: {}]  }
   0x1   :  { %8 = vsyncpa [#allocation6], 0 }
   0x2   :  { %9 = vsyncpa [#allocation4], 0  ;;  %s223_s9 = smov [#allocation2]   ;;  %s151_s13 = scalar_lea.hbm %s279_s0, 256 }
   0x3   :  { %s15_s10 = sshll.u32 %s223_s9, 4  ;;  %p152_p0 = scmp.ne.s32.totalorder %s279_s0, %s151_s13  ;;  %s16_s10 = int_to_ptr.vmem [resolvable:$true] %s15_s10 }
   0x4   :  { %p155_p1 = scmp.lt.u32.totalorder %s151_s13, %s279_s0 }
   0x6   :  { %p157_p2 = pnand %p155_p1, %p152_p0 }
   0x8   :  { %160 = shalt.err (!%p157_p2)
}
   0x9   :  { %s161_s18 = scalar_lea.vmem %s16_s10, 256  ;;  %p166_p4 = scmp.lt.s32.totalorder %s16_s10, %s16_s10 }
   0xa   :  { %p162_p3 = scmp.ne.s32.totalorder %s16_s10, %s161_s18  ;;  %p167_p5 = scmp.lt.s32.totalorder %s161_s18, %s161_s18 }
   0xc   :  { %p168_p6 = por %p167_p5, %p166_p4 }
   0xe   :  { %p169_p7 = pnand %p168_p6, %p162_p3 }
  0x10   :  { %172 = shalt.err (!%p169_p7)
}
  0x11   :  { %s224_s19 = smov 128   ;;  %s225_s20 = smov 8  }
  0x12   :  { %21 = dma.hbm_to_vmem [thread:$0]  %s279_s0, 256, %s16_s10, [#allocation3], %s224_s19, %s224_s19, %s225_s20  }
  0x13   :  { %s226_s23 = smov [#allocation5]   ;;  %s173_s27 = scalar_lea.hbm %s280_s1, 256 }
  0x14   :  { %s27_s24 = sshll.u32 %s226_s23, 4  ;;  %p174_p8 = scmp.ne.s32.totalorder %s280_s1, %s173_s27  ;;  %s28_s24 = int_to_ptr.vmem [resolvable:$true] %s27_s24 }
  0x15   :  { %p177_p9 = scmp.lt.u32.totalorder %s173_s27, %s280_s1 }
  0x17   :  { %p179_p10 = pnand %p177_p9, %p174_p8 }
  0x19   :  { %182 = shalt.err (!%p179_p10)
}
  0x1a   :  { %s183_s4 = scalar_lea.vmem %s28_s24, 256  ;;  %p188_p12 = scmp.lt.s32.totalorder %s28_s24, %s28_s24 }
  0x1b   :  { %p184_p11 = scmp.ne.s32.totalorder %s28_s24, %s183_s4  ;;  %p189_p13 = scmp.lt.s32.totalorder %s183_s4, %s183_s4 }
  0x1d   :  { %p190_p0 = por %p189_p13, %p188_p12 }
  0x1f   :  { %p191_p1 = pnand %p190_p0, %p184_p11 }
  0x21   :  { %194 = shalt.err (!%p191_p1)
}
  0x22   :  { %33 = dma.hbm_to_vmem [thread:$0]  %s280_s1, 256, %s28_s24, [#allocation6], %s224_s19, %s224_s19, %s225_s20  }
  0x23   :  { %217 = dma.done.wait [#allocation3], 256  }
  0x24   :  { %218 = vsyncadd [#allocation3], 4294967040 }
  0x25   :  { %219 = dma.done.wait [#allocation6], 256  }
  0x26   :  { %220 = vsyncadd [#allocation6], 4294967040  ;;  %v40_v0 = vld [vmem:[#allocation2] sm:$0xff]  ;;  %v41_v1 = vld [vmem:[#allocation2 + $0x8] sm:$0xff]  ;;  %s227_s1 = smov [#allocation7]  }
  0x27   :  { %v44_v2 = vand.u32 2147483647, %v40_v0  ;;  %v45_v3 = vand.u32 2147483647, %v41_v1  ;;  %v42_v12 = vld [vmem:[#allocation5] sm:$0xff]  ;;  %v43_v13 = vld [vmem:[#allocation5 + $0x8] sm:$0xff] }
  0x28   :  { %vm70_vm0 = vcmp.ge.f32.partialorder %v40_v0, 0.0  ;;  %v80_v15 = vsub.f32 1.0, %v42_v12  ;;  %vm71_vm1 = vcmp.ge.f32.partialorder %v41_v1, 0.0  ;;  %v81_v18 = vsub.f32 1.0, %v43_v13  ;;  %s116_s6 = sshll.u32 %s227_s1, 4  ;;  %s117_s6 = int_to_ptr.vmem [resolvable:$true] %s116_s6 }
  0x29   :  { %v46_v4 = vsub.f32 0.0, %v44_v2  ;;  %v47_v5 = vsub.f32 0.0, %v45_v3  ;;  %v52_v33 = vmax.f32 %v40_v0, 0.0  ;;  %v53_v35 = vmax.f32 %v41_v1, 0.0  ;;  %s195_s7 = scalar_lea.vmem %s117_s6, 128  ;;  %p200_p3 = scmp.lt.s32.totalorder %s117_s6, %s117_s6 }
  0x2a   :  { %v54_v36 = vmul.f32 %v42_v12, %v40_v0  ;;  %v55_v37 = vmul.f32 %v43_v13, %v41_v1  ;;  %v86_v48 = vmul.f32 0.25, %v42_v12  ;;  %v88_v49 = vmul.f32 0.75, %v80_v15  ;;  %p196_p2 = scmp.ne.s32.totalorder %s117_s6, %s195_s7  ;;  %p201_p4 = scmp.lt.s32.totalorder %s195_s7, %s195_s7 }
  0x2b   :  { %v48_v6 = vmul.f32 1.442695, %v46_v4  ;;  %v50_v7 = vmul.f32 1.442695, %v47_v5  ;;  %v87_v52 = vmul.f32 0.25, %v43_v13  ;;  %v89_v53 = vmul.f32 0.75, %v81_v18 }
  0x2c   :  { %v56_v44 = vsub.f32 %v52_v33, %v54_v36  ;;  %v57_v45 = vsub.f32 %v53_v35, %v55_v37  ;;  %v90_v55 = vadd.f32 %v88_v49, %v86_v48  ;;  %p202_p5 = por %p201_p4, %p200_p3 }
  0x2d   :  { %131 = vpow2.f32 %v48_v6  ;;  %v91_v57 = vadd.f32 %v89_v53, %v87_v52 }
  0x2e   :  { %133 = vpow2.f32 %v50_v7  ;;  %p203_p6 = pnand %p202_p5, %p196_p2 }
  0x37   :  { %v132_v8 = vpop.eup %131 }
  0x38   :  { %v134_v9 = vpop.eup %133  ;;  %v58_v10 = vadd.f32 1.0, %v132_v8 }
  0x39   :  { %v59_v11 = vadd.f32 1.0, %v134_v9 }
  0x3a   :  { %135 = vrcp.f32 %v58_v10 }
  0x3b   :  { %137 = vrcp.f32 %v59_v11 }
  0x44   :  { %v136_v14 = vpop.eup %135 }
  0x45   :  { %v138_v16 = vpop.eup %137  ;;  %v72_v17 = vmul.f32 %v136_v14, %v132_v8 }
  0x46   :  { %v73_v19 = vmul.f32 %v138_v16, %v134_v9 }
  0x47   :  { %v74_v20 = vsel %vm70_vm0, %v136_v14, %v72_v17 }
  0x48   :  { %v75_v21 = vsel %vm71_vm1, %v138_v16, %v73_v19  ;;  %v76_v22 = vsub.f32 1.0, %v74_v20  ;;  %v82_v23 = vmul.f32 %v80_v15, %v74_v20 }
  0x49   :  { %v77_v24 = vsub.f32 1.0, %v75_v21  ;;  %v83_v25 = vmul.f32 %v81_v18, %v75_v21 }
  0x4a   :  { %v78_v26 = vmul.f32 %v76_v22, %v42_v12 }
  0x4b   :  { %v79_v27 = vmul.f32 %v77_v24, %v43_v13 }
  0x4c   :  { %v84_v28 = vadd.f32 %v82_v23, %v78_v26 }
  0x4d   :  { %v85_v29 = vadd.f32 %v83_v25, %v79_v27 }
  0x4e   :  { %v92_v30 = vmax.f32 %v84_v28, 1e-37 }
  0x4f   :  { %v93_v31 = vmax.f32 %v85_v29, 1e-37 }
  0x50   :  { %139 = vlog2.f32 %v92_v30 }
  0x51   :  { %141 = vlog2.f32 %v93_v31 }
  0x52   :  { %143 = vlog2.f32 %v58_v10 }
  0x53   :  { %145 = vlog2.f32 %v59_v11 }
  0x5a   :  { %v140_v32 = vpop.eup %139 }
  0x5b   :  { %v142_v34 = vpop.eup %141  ;;  %v95_v38 = vmul.f32 0.6931472, %v140_v32 }
  0x5c   :  { %v97_v39 = vmul.f32 0.6931472, %v142_v34  ;;  %v144_v40 = vpop.eup %143 }
  0x5d   :  { %v98_v41 = vmul.f32 1.5, %v95_v38  ;;  %v146_v42 = vpop.eup %145  ;;  %v61_v47 = vmul.f32 0.6931472, %v144_v40 }
  0x5e   :  { %v99_v43 = vmul.f32 1.5, %v97_v39  ;;  %v63_v51 = vmul.f32 0.6931472, %v146_v42 }
  0x5f   :  { %v100_v46 = vmul.f32 1.442695, %v98_v41  ;;  %v64_v54 = vadd.f32 %v61_v47, %v56_v44 }
  0x60   :  { %v102_v50 = vmul.f32 1.442695, %v99_v43  ;;  %v65_v56 = vadd.f32 %v63_v51, %v57_v45 }
  0x61   :  { %147 = vpow2.f32 %v100_v46  ;;  %v104_v58 = vmul.f32 %v90_v55, %v64_v54 }
  0x62   :  { %149 = vpow2.f32 %v102_v50  ;;  %v105_v59 = vmul.f32 %v91_v57, %v65_v56 }
  0x6b   :  { %v148_v60 = vpop.eup %147 }
  0x6c   :  { %v150_v61 = vpop.eup %149  ;;  %v106_v62 = vmul.f32 %v148_v60, %v104_v58 }
  0x6d   :  { %v107_v63 = vmul.f32 %v150_v61, %v105_v59 }
  0x6f   :  { %v108_v0 = vadd.f32 %v107_v63, %v106_v62 }
  0x71   :  { %109 = vst [vmem:[#allocation7] sm:$0xff] %v108_v0 }
  0x72   :  { %206 = shalt.err (!%p203_p6)
}
  0x73   :  { %s207_s10 = scalar_lea.hbm %s281_s2, 128 }
  0x74   :  { %p208_p7 = scmp.ne.s32.totalorder %s281_s2, %s207_s10  ;;  %p211_p8 = scmp.lt.u32.totalorder %s207_s10, %s281_s2 }
  0x76   :  { %p213_p9 = pnand %p211_p8, %p208_p7 }
  0x78   :  { %216 = shalt.err (!%p213_p9)
}
  0x79   :  { %119 = dma.vmem_to_hbm [thread:$0]  %s117_s6, 128, %s281_s2, [#allocation4]  }
  0x7a   :  { %221 = dma.done.wait [#allocation4], 128  }
  0x7b   :  { %222 = vsyncadd [#allocation4], 4294967168 }
  0x7c   :  { %123 = vsyncpa [#allocation3], 1 }
  0x7d   :  { %124 = vsyncpa [#allocation6], 1 }
  0x7e   :  { %125 = vsyncpa [#allocation4], 1 }

</bundles_post_ra>
